<compile_context>
chip_gen: v7x
topology: tpu7x:2x2x1
jax: 0.10.0
libtpu: 0.0.40
codegen_flags: <defaults>
</compile_context>

<pallas_src>
import jax
import jax.numpy as jnp
from jax.experimental import pallas as pl
from jax.experimental.pallas import tpu as pltpu


def autoencoder_kernel(x_ref, w1t_ref, w2t_ref, dec_ref, enc_ref):
    x = x_ref[...]                         # (tb, in_p)
    w1t = w1t_ref[...]                     # (in_p, hid_p)  = w1.T padded
    w2t = w2t_ref[...]                     # (hid_p, in_p)  = w2.T padded

    # encoded = x @ w1.T  -> (tb, hid_p); contraction on RHS leading dim (no transpose)
    encoded = jnp.dot(x, w1t, preferred_element_type=jnp.float32)
    # decoded = encoded @ w2.T -> (tb, in_p)
    decoded = jnp.dot(encoded.astype(x.dtype), w2t,
                      preferred_element_type=jnp.float32)

    enc_ref[...] = encoded.astype(enc_ref.dtype)
    dec_ref[...] = decoded.astype(dec_ref.dtype)


def _round_up(n, m):
    return ((n + m - 1) // m) * m


def autoencoder_forward(x, w1, w2, *, block_b=256):
    """x: (B, input_size); w1: (hidden, input) ; w2: (input, hidden)  [nn.Linear layout].

    Returns (decoded, encoded) exactly as the PyTorch module's forward.
    """
    B, input_size = x.shape
    hidden_size = w1.shape[0]
    dtype = x.dtype

    # Lane-dense feature dims (multiples of 128), sublane-aligned batch tile.
    in_p = _round_up(input_size, 128)
    hid_p = _round_up(hidden_size, 128)
    tb = min(block_b, _round_up(B, 8))
    B_p = _round_up(B, tb)

    # Wrapper-side layout plumbing: zero-pad + pre-transpose the weights.
    x_p = jnp.zeros((B_p, in_p), dtype).at[:B, :input_size].set(x)
    w1t = jnp.zeros((in_p, hid_p), dtype).at[:input_size, :hidden_size].set(w1.T)
    w2t = jnp.zeros((hid_p, in_p), dtype).at[:hidden_size, :input_size].set(w2.T)

    grid = (B_p // tb,)

    dec_p, enc_p = pl.pallas_call(
        autoencoder_kernel,
        out_shape=(
            jax.ShapeDtypeStruct((B_p, in_p), dtype),    # decoded (padded)
            jax.ShapeDtypeStruct((B_p, hid_p), dtype),   # encoded (padded)
        ),
        grid=grid,
        in_specs=[
            pl.BlockSpec((tb, in_p), lambda i: (i, 0)),        # x streams over batch
            pl.BlockSpec((in_p, hid_p), lambda i: (0, 0)),     # w1.T resident in VMEM
            pl.BlockSpec((hid_p, in_p), lambda i: (0, 0)),     # w2.T resident in VMEM
        ],
        out_specs=(
            pl.BlockSpec((tb, in_p), lambda i: (i, 0)),
            pl.BlockSpec((tb, hid_p), lambda i: (i, 0)),
        ),
        compiler_params=pltpu.CompilerParams(
            dimension_semantics=("parallel",),
        ),
    )(x_p, w1t, w2t)

    decoded = dec_p[:B, :input_size]
    encoded = enc_p[:B, :hidden_size]
    return decoded, encoded


if __name__ == "__main__":
    input_size = 20
    hidden_size = 20
    batch = 8

    key = jax.random.PRNGKey(0)
    kx, k1, k2 = jax.random.split(key, 3)

    x = jax.random.normal(kx, (batch, input_size), dtype=jnp.float32)
    # deterministic "kaiming-uniform-like" init, same shapes as nn.Linear weights
    bound1 = 1.0 / (input_size ** 0.5)
    bound2 = 1.0 / (hidden_size ** 0.5)
    w1 = jax.random.uniform(k1, (hidden_size, input_size), jnp.float32, -bound1, bound1)
    w2 = jax.random.uniform(k2, (input_size, hidden_size), jnp.float32, -bound2, bound2)

    decoded, encoded = autoencoder_forward(x, w1, w2)
    jax.block_until_ready((decoded, encoded))

    # reference check in plain JAX (matches PyTorch forward semantics)
    enc_ref = x @ w1.T
    dec_ref = enc_ref @ w2.T
    assert encoded.shape == (batch, hidden_size)
    assert decoded.shape == (batch, input_size)
    assert jnp.allclose(encoded, enc_ref, atol=1e-5, rtol=1e-5)
    assert jnp.allclose(decoded, dec_ref, atol=1e-5, rtol=1e-5)

    print("KERNEL_OK")
</pallas_src>

<mosaic_0001>
module attributes {stable_mosaic.version = 11 : i64} {
  func.func @autoencoder_kernel(%arg0: i32, %arg1: memref<8x128xf32, #tpu.memory_space<vmem>>, %arg2: memref<128x128xf32, #tpu.memory_space<vmem>>, %arg3: memref<128x128xf32, #tpu.memory_space<vmem>>, %arg4: memref<8x128xf32, #tpu.memory_space<vmem>>, %arg5: memref<8x128xf32, #tpu.memory_space<vmem>>) attributes {dimension_semantics = [#tpu.dimension_semantics<parallel>], iteration_bounds = array<i64: 1>, scalar_prefetch = 0 : i64, scratch_operands = 0 : i64, tpu.core_type = #tpu.core_type<tc>, window_params = [{transform_indices = @transform_0, window_bounds = array<i64: 8, 128>}, {pipeline_mode = #tpu.pipeline_mode<synchronous>, transform_indices = @transform_1, window_bounds = array<i64: 128, 128>}, {pipeline_mode = #tpu.pipeline_mode<synchronous>, transform_indices = @transform_2, window_bounds = array<i64: 128, 128>}, {transform_indices = @transform_3, window_bounds = array<i64: 8, 128>}, {transform_indices = @transform_4, window_bounds = array<i64: 8, 128>}]} {
    %c0 = arith.constant 0 : index
    %c0_0 = arith.constant 0 : index
    %0 = vector.load %arg1[%c0, %c0_0] : memref<8x128xf32, #tpu.memory_space<vmem>>, vector<8x128xf32>
    %c0_1 = arith.constant 0 : index
    %c0_2 = arith.constant 0 : index
    %1 = vector.load %arg2[%c0_1, %c0_2] : memref<128x128xf32, #tpu.memory_space<vmem>>, vector<128x128xf32>
    %c0_3 = arith.constant 0 : index
    %c0_4 = arith.constant 0 : index
    %2 = vector.load %arg3[%c0_3, %c0_4] : memref<128x128xf32, #tpu.memory_space<vmem>>, vector<128x128xf32>
    %cst = arith.constant dense<0.000000e+00> : vector<8x128xf32>
    %3 = tpu.matmul %0, %1, %cst {dimension_numbers = #tpu.dot_dimension_numbers<[1], [0], [0], [1], [0, 0, 1, 1], [], []>} : vector<8x128xf32>, vector<128x128xf32>, vector<8x128xf32> -> vector<8x128xf32>
    %cst_5 = arith.constant dense<0.000000e+00> : vector<8x128xf32>
    %4 = tpu.matmul %3, %2, %cst_5 {dimension_numbers = #tpu.dot_dimension_numbers<[1], [0], [0], [1], [0, 0, 1, 1], [], []>} : vector<8x128xf32>, vector<128x128xf32>, vector<8x128xf32> -> vector<8x128xf32>
    %c0_6 = arith.constant 0 : index
    %c0_7 = arith.constant 0 : index
    %5 = vector.load %arg5[%c0_6, %c0_7] : memref<8x128xf32, #tpu.memory_space<vmem>>, vector<8x128xf32>
    tpu.vector_store %arg5[%c0_6, %c0_7], %3 {strides = array<i32>} : memref<8x128xf32, #tpu.memory_space<vmem>>, vector<8x128xf32>,
    %c0_8 = arith.constant 0 : index
    %c0_9 = arith.constant 0 : index
    %6 = vector.load %arg4[%c0_8, %c0_9] : memref<8x128xf32, #tpu.memory_space<vmem>>, vector<8x128xf32>
    tpu.vector_store %arg4[%c0_8, %c0_9], %4 {strides = array<i32>} : memref<8x128xf32, #tpu.memory_space<vmem>>, vector<8x128xf32>,
    return
  }
  func.func @transform_0(%arg0: i32) -> (i32, i32) {
    %c0_i32 = arith.constant 0 : i32
    %c0_i32_0 = arith.constant 0 : i32
    return %arg0, %c0_i32 : i32, i32
  }
  func.func @transform_1(%arg0: i32) -> (i32, i32) {
    %c0_i32 = arith.constant 0 : i32
    %c0_i32_0 = arith.constant 0 : i32
    %c0_i32_1 = arith.constant 0 : i32
    return %c0_i32, %c0_i32_0 : i32, i32
  }
  func.func @transform_2(%arg0: i32) -> (i32, i32) {
    %c0_i32 = arith.constant 0 : i32
    %c0_i32_0 = arith.constant 0 : i32
    %c0_i32_1 = arith.constant 0 : i32
    return %c0_i32, %c0_i32_0 : i32, i32
  }
  func.func @transform_3(%arg0: i32) -> (i32, i32) {
    %c0_i32 = arith.constant 0 : i32
    %c0_i32_0 = arith.constant 0 : i32
    return %arg0, %c0_i32 : i32, i32
  }
  func.func @transform_4(%arg0: i32) -> (i32, i32) {
    %c0_i32 = arith.constant 0 : i32
    %c0_i32_0 = arith.constant 0 : i32
    return %arg0, %c0_i32 : i32, i32
  }
}

</mosaic_0001>

<bundles_post_ra>
// kernel: tpu_custom_call.1
= control target key start
LH: loop header
LB: loop body
LE: loop exit
PB: predicated region body
PF: predicated region fallthrough
CT: control target
= control target key end

     0   :  { %10 = vsyncpa [#allocation3], 0  ;;  %s659_s0 = inlined_call_operand.hbm [shape: f32[8,128], index: 0, kind: input, shape index: {}]   ;;  %s660_s1 = inlined_call_operand.hbm [shape: f32[128,128], index: 1, kind: input, shape index: {}]   ;;  %s661_s2 = inlined_call_operand.hbm [shape: f32[128,128], index: 2, kind: input, shape index: {}]   ;;  %s662_s3 = inlined_call_operand.hbm [shape: f32[8,128], index: 3, kind: output, shape index: {0}]   ;;  %s663_s4 = inlined_call_operand.hbm [shape: f32[8,128], index: 4, kind: output, shape index: {1}]  }
   0x1   :  { %11 = vsyncpa [#allocation6], 0 }
   0x2   :  { %12 = vsyncpa [#allocation4], 0 }
   0x3   :  { %13 = vsyncpa [#allocation10], 0  ;;  %s542_s15 = smov [#allocation5]   ;;  %s424_s19 = scalar_lea.hbm %s660_s1, 2048 }
   0x4   :  { %s29_s16 = sshll.u32 %s542_s15, 4  ;;  %p425_p0 = scmp.ne.s32.totalorder %s660_s1, %s424_s19  ;;  %s30_s16 = int_to_ptr.vmem [resolvable:$true] %s29_s16 }
   0x5   :  { %p428_p1 = scmp.lt.u32.totalorder %s424_s19, %s660_s1 }
   0x7   :  { %p430_p2 = pnand %p428_p1, %p425_p0 }
   0x9   :  { %433 = shalt.err (!%p430_p2)
}
   0xa   :  { %s434_s24 = scalar_lea.vmem %s30_s16, 2048  ;;  %p439_p4 = scmp.lt.s32.totalorder %s30_s16, %s30_s16 }
   0xb   :  { %p435_p3 = scmp.ne.s32.totalorder %s30_s16, %s434_s24  ;;  %p440_p5 = scmp.lt.s32.totalorder %s434_s24, %s434_s24 }
   0xd   :  { %p441_p6 = por %p440_p5, %p439_p4 }
   0xf   :  { %p442_p7 = pnand %p441_p6, %p435_p3 }
  0x11   :  { %445 = shalt.err (!%p442_p7)
}
  0x12   :  { %s543_s25 = smov 128   ;;  %s544_s26 = smov 8  }
  0x13   :  { %35 = dma.hbm_to_vmem [thread:$0]  %s660_s1, 2048, %s30_s16, [#allocation6], %s543_s25, %s543_s25, %s544_s26  }
  0x14   :  { %s545_s29 = smov [#allocation2]   ;;  %s546_s5 = smov [#allocation7]  }
  0x15   :  { %s20_s30 = sshll.u32 %s545_s29, 4  ;;  %s41_s6 = sshll.u32 %s546_s5, 4  ;;  %s21_s30 = int_to_ptr.vmem [resolvable:$true] %s20_s30  ;;  %s42_s6 = int_to_ptr.vmem [resolvable:$true] %s41_s6 }
  0x16   :  { %s446_s9 = scalar_lea.hbm %s659_s0, 128 }
  0x17   :  { %p447_p8 = scmp.ne.s32.totalorder %s659_s0, %s446_s9  ;;  %p450_p9 = scmp.lt.u32.totalorder %s446_s9, %s659_s0 }
  0x19   :  { %p452_p10 = pnand %p450_p9, %p447_p8 }
  0x1b   :  { %455 = shalt.err (!%p452_p10)
}
  0x1c   :  { %s456_s1 = scalar_lea.vmem %s21_s30, 128  ;;  %p461_p12 = scmp.lt.s32.totalorder %s21_s30, %s21_s30 }
  0x1d   :  { %p457_p11 = scmp.ne.s32.totalorder %s21_s30, %s456_s1  ;;  %p462_p13 = scmp.lt.s32.totalorder %s456_s1, %s456_s1 }
  0x1f   :  { %p463_p0 = por %p462_p13, %p461_p12 }
  0x21   :  { %p464_p1 = pnand %p463_p0, %p457_p11 }
  0x23   :  { %467 = shalt.err (!%p464_p1)
}
  0x24   :  { %23 = dma.hbm_to_vmem [thread:$0]  %s659_s0, 128, %s21_s30, [#allocation3]  }
  0x25   :  { %s468_s18 = scalar_lea.hbm %s661_s2, 2048 }
  0x26   :  { %p469_p2 = scmp.ne.s32.totalorder %s661_s2, %s468_s18  ;;  %p472_p3 = scmp.lt.u32.totalorder %s468_s18, %s661_s2 }
  0x28   :  { %p474_p4 = pnand %p472_p3, %p469_p2 }
  0x2a   :  { %477 = shalt.err (!%p474_p4)
}
  0x2b   :  { %s478_s23 = scalar_lea.vmem %s42_s6, 2048  ;;  %p483_p6 = scmp.lt.s32.totalorder %s42_s6, %s42_s6 }
  0x2c   :  { %p479_p5 = scmp.ne.s32.totalorder %s42_s6, %s478_s23  ;;  %p484_p7 = scmp.lt.s32.totalorder %s478_s23, %s478_s23 }
  0x2e   :  { %p485_p8 = por %p484_p7, %p483_p6 }
  0x30   :  { %p486_p9 = pnand %p485_p8, %p479_p5 }
  0x32   :  { %489 = shalt.err (!%p486_p9)
}
  0x33   :  { %47 = dma.hbm_to_vmem [thread:$0]  %s661_s2, 2048, %s42_s6, [#allocation6], %s543_s25, %s543_s25, %s544_s26  }
  0x34   :  { %534 = dma.done.wait [#allocation3], 128  }
  0x35   :  { %535 = vsyncadd [#allocation3], 4294967168 }
  0x36   :  { %536 = dma.done.wait [#allocation6], 4096  }
  0x37   :  { %537 = vsyncadd [#allocation6], 4294963200  ;;  %v547_v0 = vmov 0.0|0.0   ;;  %vm548_vm0 = vmmov 0   ;;  %v549_v1 = vmov 0.0   ;;  %v58_v2 = vld [vmem:[#allocation5] sm:$0xff] }
  0x38   :  { %366 = vmatprep.subr.bf16.mxu0 %v547_v0  ;;  %328 = vmatprep.mubr.msk.f32.mxu0 %vm548_vm0, %v549_v1  ;;  %v59_v3 = vld [vmem:[#allocation5 + $0x8] sm:$0xff]  ;;  %v60_v4 = vld [vmem:[#allocation5 + $0x10] sm:$0xff]  ;;  %v61_v6 = vld [vmem:[#allocation5 + $0x18] sm:$0xff]  ;;  %s550_s2 = smov [#allocation9]  }
  0x39   :  { %390 = vmatprep.subr.bf16.mxu1 %v547_v0  ;;  %363 = vmatprep.mubr.msk.f32.mxu1 %vm548_vm0, %v549_v1  ;;  %v367_v5 = vpack.c.bf16 %v59_v3, %v58_v2  ;;  %v370_v7 = vpack.c.bf16 %v61_v6, %v60_v4  ;;  %v62_v8 = vld [vmem:[#allocation5 + $0x20] sm:$0xff]  ;;  %v63_v9 = vld [vmem:[#allocation5 + $0x28] sm:$0xff]  ;;  %v76_v12 = vld [vmem:[#allocation7 + $0x10] sm:$0xff]  ;;  %s248_s25 = sshll.u32 %s550_s2, 4  ;;  %s249_s25 = int_to_ptr.vmem [resolvable:$true] %s248_s25 }
  0x3a   :  { %v74_v10 = vld [vmem:[#allocation7] sm:$0xff]  ;;  %v75_v11 = vld [vmem:[#allocation7 + $0x8] sm:$0xff]  ;;  %v77_v13 = vld [vmem:[#allocation7 + $0x18] sm:$0xff]  ;;  %v373_v14 = vpack.c.bf16 %v63_v9, %v62_v8  ;;  %s490_s26 = scalar_lea.vmem %s249_s25, 128  ;;  %p495_p11 = scmp.lt.s32.totalorder %s249_s25, %s249_s25 }
  0x3b   :  { %368 = vmatpush3.bf16.msra.mxu0 %v367_v5  ;;  %v391_v15 = vpack.c.bf16 %v75_v11, %v74_v10  ;;  %v64_v16 = vld [vmem:[#allocation5 + $0x30] sm:$0xff]  ;;  %v65_v17 = vld [vmem:[#allocation5 + $0x38] sm:$0xff]  ;;  %v394_v18 = vpack.c.bf16 %v77_v13, %v76_v12  ;;  %v78_v19 = vld [vmem:[#allocation7 + $0x20] sm:$0xff]  ;;  %p491_p10 = scmp.ne.s32.totalorder %s249_s25, %s490_s26  ;;  %p496_p12 = scmp.lt.s32.totalorder %s490_s26, %s490_s26 }
  0x3c   :  { %369 = vmatprep.subr.bf16.mxu0 %v547_v0  ;;  %v79_v20 = vld [vmem:[#allocation7 + $0x28] sm:$0xff]  ;;  %v376_v21 = vpack.c.bf16 %v65_v17, %v64_v16  ;;  %v66_v22 = vld [vmem:[#allocation5 + $0x40] sm:$0xff]  ;;  %v80_v25 = vld [vmem:[#allocation7 + $0x30] sm:$0xff] }
  0x3d   :  { %392 = vmatpush3.bf16.msra.mxu1 %v391_v15  ;;  %v67_v23 = vld [vmem:[#allocation5 + $0x48] sm:$0xff]  ;;  %v397_v24 = vpack.c.bf16 %v79_v20, %v78_v19  ;;  %v81_v26 = vld [vmem:[#allocation7 + $0x38] sm:$0xff]  ;;  %v68_v28 = vld [vmem:[#allocation5 + $0x50] sm:$0xff]  ;;  %p497_p13 = por %p496_p12, %p495_p11 }
  0x3e   :  { %393 = vmatprep.subr.bf16.mxu1 %v547_v0  ;;  %v379_v27 = vpack.c.bf16 %v67_v23, %v66_v22  ;;  %v69_v29 = vld [vmem:[#allocation5 + $0x58] sm:$0xff]  ;;  %v400_v30 = vpack.c.bf16 %v81_v26, %v80_v25  ;;  %v82_v31 = vld [vmem:[#allocation7 + $0x40] sm:$0xff]  ;;  %v83_v32 = vld [vmem:[#allocation7 + $0x48] sm:$0xff] }
  0x3f   :  { %371 = vmatpush3.bf16.msra.mxu0 %v370_v7  ;;  %v382_v33 = vpack.c.bf16 %v69_v29, %v68_v28  ;;  %v70_v34 = vld [vmem:[#allocation5 + $0x60] sm:$0xff]  ;;  %v71_v35 = vld [vmem:[#allocation5 + $0x68] sm:$0xff]  ;;  %v403_v36 = vpack.c.bf16 %v83_v32, %v82_v31  ;;  %v84_v37 = vld [vmem:[#allocation7 + $0x50] sm:$0xff]  ;;  %p498_p0 = pnand %p497_p13, %p491_p10 }
  0x40   :  { %372 = vmatprep.subr.bf16.mxu0 %v547_v0  ;;  %v85_v38 = vld [vmem:[#allocation7 + $0x58] sm:$0xff]  ;;  %v385_v39 = vpack.c.bf16 %v71_v35, %v70_v34  ;;  %v72_v40 = vld [vmem:[#allocation5 + $0x70] sm:$0xff]  ;;  %v86_v43 = vld [vmem:[#allocation7 + $0x60] sm:$0xff] }
  0x41   :  { %395 = vmatpush3.bf16.msra.mxu1 %v394_v18  ;;  %v73_v41 = vld [vmem:[#allocation5 + $0x78] sm:$0xff]  ;;  %v406_v42 = vpack.c.bf16 %v85_v38, %v84_v37  ;;  %v87_v44 = vld [vmem:[#allocation7 + $0x68] sm:$0xff]  ;;  %v88_v47 = vld [vmem:[#allocation7 + $0x70] sm:$0xff] }
  0x42   :  { %396 = vmatprep.subr.bf16.mxu1 %v547_v0  ;;  %v388_v45 = vpack.c.bf16 %v73_v41, %v72_v40  ;;  %v409_v46 = vpack.c.bf16 %v87_v44, %v86_v43  ;;  %v89_v48 = vld [vmem:[#allocation7 + $0x78] sm:$0xff] }
  0x43   :  { %374 = vmatpush3.bf16.msra.mxu0 %v373_v14  ;;  %v57_v49 = vld [vmem:[#allocation2] sm:$0xff]  ;;  %v412_v50 = vpack.c.bf16 %v89_v48, %v88_v47 }
  0x44   :  { %375 = vmatprep.subr.bf16.mxu0 %v547_v0 }
  0x45   :  { %398 = vmatpush3.bf16.msra.mxu1 %v397_v24 }
  0x46   :  { %399 = vmatprep.subr.bf16.mxu1 %v547_v0 }
  0x47   :  { %377 = vmatpush3.bf16.msra.mxu0 %v376_v21 }
  0x48   :  { %378 = vmatprep.subr.bf16.mxu0 %v547_v0 }
  0x49   :  { %401 = vmatpush3.bf16.msra.mxu1 %v400_v30 }
  0x4a   :  { %402 = vmatprep.subr.bf16.mxu1 %v547_v0 }
  0x4b   :  { %380 = vmatpush3.bf16.msra.mxu0 %v379_v27 }
  0x4c   :  { %381 = vmatprep.subr.bf16.mxu0 %v547_v0 }
  0x4d   :  { %404 = vmatpush3.bf16.msra.mxu1 %v403_v36 }
  0x4e   :  { %405 = vmatprep.subr.bf16.mxu1 %v547_v0 }
  0x4f   :  { %383 = vmatpush3.bf16.msra.mxu0 %v382_v33 }
  0x50   :  { %384 = vmatprep.subr.bf16.mxu0 %v547_v0 }
  0x51   :  { %407 = vmatpush3.bf16.msra.mxu1 %v406_v42 }
  0x52   :  { %408 = vmatprep.subr.bf16.mxu1 %v547_v0 }
  0x53   :  { %386 = vmatpush3.bf16.msra.mxu0 %v385_v39 }
  0x54   :  { %387 = vmatprep.subr.bf16.mxu0 %v547_v0 }
  0x55   :  { %410 = vmatpush3.bf16.msra.mxu1 %v409_v46 }
  0x56   :  { %411 = vmatprep.subr.bf16.mxu1 %v547_v0 }
  0x57   :  { %389 = vmatpush3.bf16.msra.mxu0 %v388_v45 }
  0x59   :  { %413 = vmatpush3.bf16.msra.mxu1 %v412_v50 }
  0x5a   :  { %329 = vmatmul.mubr.f32.vlgmr.msra.gmra.mrb[0].mxu0 %v57_v49 }
 0x12d   :  { %v156_v51 = vpop.f32.mrb[0].mxu0 }
 0x12e   :  { %230 = vst [vmem:[#allocation9] sm:$0xff] %v156_v51  ;;  %v330_v52 = vpop.f32.mrb[1].mxu0  ;;  %364 = vmatmul.mubr.f32.vlgmr.msra.gmra.mrb[0].mxu1 %v156_v51 }
 0x12f   :  { %501 = shalt.err (!%p498_p0)
}
 0x130   :  { %s502_s29 = scalar_lea.hbm %s663_s4, 128 }
 0x131   :  { %p503_p1 = scmp.ne.s32.totalorder %s663_s4, %s502_s29  ;;  %p506_p2 = scmp.lt.u32.totalorder %s502_s29, %s663_s4 }
 0x133   :  { %p508_p3 = pnand %p506_p2, %p503_p1 }
 0x135   :  { %511 = shalt.err (!%p508_p3)
}
 0x136   :  { %251 = dma.vmem_to_hbm [thread:$0]  %s249_s25, 128, %s663_s4, [#allocation10]  }
 0x137   :  { %s551_s10 = smov [#allocation8]  }
 0x138   :  { %s238_s11 = sshll.u32 %s551_s10, 4  ;;  %s239_s11 = int_to_ptr.vmem [resolvable:$true] %s238_s11 }
 0x139   :  { %s512_s12 = scalar_lea.vmem %s239_s11, 128  ;;  %p517_p5 = scmp.lt.s32.totalorder %s239_s11, %s239_s11 }
 0x13a   :  { %p513_p4 = scmp.ne.s32.totalorder %s239_s11, %s512_s12  ;;  %p518_p6 = scmp.lt.s32.totalorder %s512_s12, %s512_s12 }
 0x13c   :  { %p519_p7 = por %p518_p6, %p517_p5 }
 0x13e   :  { %p520_p8 = pnand %p519_p7, %p513_p4 }
 0x201   :  { %v226_v53 = vpop.f32.mrb[0].mxu1 }
 0x202   :  { %231 = vst [vmem:[#allocation8] sm:$0xff] %v226_v53  ;;  %v365_v54 = vpop.f32.mrb[1].mxu1 }
 0x203   :  { %523 = shalt.err (!%p520_p8)
}
 0x204   :  { %s524_s14 = scalar_lea.hbm %s662_s3, 128 }
 0x205   :  { %p525_p9 = scmp.ne.s32.totalorder %s662_s3, %s524_s14  ;;  %p528_p10 = scmp.lt.u32.totalorder %s524_s14, %s662_s3 }
 0x207   :  { %p530_p11 = pnand %p528_p10, %p525_p9 }
 0x209   :  { %533 = shalt.err (!%p530_p11)
}
 0x20a   :  { %241 = dma.vmem_to_hbm [thread:$0]  %s239_s11, 128, %s662_s3, [#allocation4]  }
 0x20b   :  { %538 = dma.done.wait [#allocation4], 128  }
 0x20c   :  { %539 = vsyncadd [#allocation4], 4294967168 }
 0x20d   :  { %540 = dma.done.wait [#allocation10], 128  }
 0x20e   :  { %541 = vsyncadd [#allocation10], 4294967168 }
 0x20f   :  { %258 = vsyncpa [#allocation3], 1 }
 0x210   :  { %259 = vsyncpa [#allocation6], 1 }
 0x211   :  { %260 = vsyncpa [#allocation4], 1 }
 0x212   :  { %261 = vsyncpa [#allocation10], 1 }

</bundles_post_ra>
